<compile_context>
chip_gen: v5e
topology: v5e:2x2
jax: 0.10.0
libtpu: 0.0.40
codegen_flags: <defaults>
</compile_context>

<pallas_src>
import functools

import jax
import jax.numpy as jnp
from jax.experimental import pallas as pl
from jax.experimental.pallas import tpu as pltpu


_LANES = 1024           # lane-dense last dim (8 * 128) -> unmasked full-width stores
_MAX_TILE_ROWS = 1024   # (1024, 1024) f32 tile = 4 MiB; in+out double-buffered fits 32 MiB scoped VMEM


def _scale_kernel(scale_ref, x_ref, o_ref):
    # scale_ref: (1,) f32 scalar in SMEM; x_ref/o_ref: (tile_rows, _LANES) VMEM tiles.
    # Cast the scalar once and multiply in the input dtype (no per-vreg up/down cast).
    o_ref[...] = x_ref[...] * scale_ref[0].astype(x_ref.dtype)


def _tiling(total):
    """Pick (tile_rows, rows_padded) for a (rows, _LANES) lane-dense view of `total` elems."""
    rows = pl.cdiv(total, _LANES)
    if rows <= _MAX_TILE_ROWS:
        # Single block covering the full array: exempt from the (8, 128) divisibility rule.
        return rows, rows
    tile_rows = _MAX_TILE_ROWS                      # multiple of 8
    rows_padded = pl.cdiv(rows, tile_rows) * tile_rows
    return tile_rows, rows_padded


@functools.partial(jax.jit, static_argnames=("scale_min", "scale_max"))
def random_intensity_scale(x, y, key, scale_min=0.9, scale_max=1.1):
    """Pallas implementation of RandomIntensityScale.forward.

    Draws one uniform scalar in [scale_min, scale_max) from `key`, multiplies x
    by it inside a tiled, lane-dense Pallas kernel, and returns (scaled_x, y).
    """
    scale = jax.random.uniform(
        key, (1,), dtype=jnp.float32, minval=scale_min, maxval=scale_max
    )

    orig_shape = x.shape
    total = x.size
    tile_rows, rows_padded = _tiling(total)
    padded_total = rows_padded * _LANES

    # Lane-dense flattened 2D view (pad only if total isn't a multiple of the tiling).
    x_flat = x.reshape(-1)
    if padded_total != total:
        x_flat = jnp.pad(x_flat, (0, padded_total - total))
    x2d = x_flat.reshape(rows_padded, _LANES)

    out2d = pl.pallas_call(
        _scale_kernel,
        out_shape=jax.ShapeDtypeStruct((rows_padded, _LANES), x.dtype),
        grid=(rows_padded // tile_rows,),
        in_specs=[
            pl.BlockSpec(memory_space=pltpu.SMEM),                 # (1,) scale scalar
            pl.BlockSpec((tile_rows, _LANES), lambda i: (i, 0)),   # lane-dense x tile
        ],
        out_specs=pl.BlockSpec((tile_rows, _LANES), lambda i: (i, 0)),
        input_output_aliases={1: 0},                               # scale in place (x2d is an intermediate)
        compiler_params=pltpu.CompilerParams(
            dimension_semantics=("parallel",),                     # shard row grid across TCs (v7x)
            vmem_limit_bytes=32 * 1024 * 1024,                     # above v5e's 16 MiB scoped default
        ),
    )(scale, x2d)

    out_flat = out2d.reshape(-1)
    if padded_total != total:
        out_flat = out_flat[:total]
    return out_flat.reshape(orig_shape), y


if __name__ == "__main__":
    key = jax.random.PRNGKey(0)
    kx, ky, kscale = jax.random.split(key, 3)

    # Small shapes consistent with an image-augmentation module (NCHW) + label map.
    x = jax.random.normal(kx, (2, 4, 16, 16), dtype=jnp.float32)
    y = jax.random.randint(ky, (2, 16, 16), 0, 5)  # passes through unchanged

    out_x, out_y = random_intensity_scale(x, y, kscale)
    jax.block_until_ready(out_x)
    jax.block_until_ready(out_y)

    # Reference check: plain-JAX equivalent with the same scale draw.
    scale = jax.random.uniform(kscale, (1,), dtype=jnp.float32, minval=0.9, maxval=1.1)
    ref_x = x * scale[0]
    assert jnp.allclose(out_x, ref_x, rtol=1e-6, atol=1e-6)
    assert (out_y == y).all()

    print("KERNEL_OK")
</pallas_src>

<mosaic_0001>
module attributes {stable_mosaic.version = 11 : i64} {
  func.func @_scale_kernel(%arg0: i32, %arg1: memref<1xf32, #tpu.memory_space<smem>>, %arg2: memref<2x1024xf32, #tpu.memory_space<vmem>>, %arg3: memref<2x1024xf32, #tpu.memory_space<vmem>>) attributes {dimension_semantics = [#tpu.dimension_semantics<parallel>], iteration_bounds = array<i64: 1>, scalar_prefetch = 0 : i64, scratch_operands = 0 : i64, tpu.core_type = #tpu.core_type<tc>, window_params = [{transform_indices = @transform_0, window_bounds = array<i64: 1>}, {transform_indices = @transform_1, window_bounds = array<i64: 2, 1024>}, {transform_indices = @transform_2, window_bounds = array<i64: 2, 1024>}]} {
    %c0 = arith.constant 0 : index
    %c0_0 = arith.constant 0 : index
    %0 = vector.load %arg2[%c0, %c0_0] : memref<2x1024xf32, #tpu.memory_space<vmem>>, vector<2x1024xf32>
    %c0_1 = arith.constant 0 : index
    %1 = memref.load %arg1[%c0_1] : memref<1xf32, #tpu.memory_space<smem>>
    %2 = vector.broadcast %1 : f32 to vector<2x1024xf32>
    %3 = arith.mulf %0, %2 : vector<2x1024xf32>
    %c0_2 = arith.constant 0 : index
    %c0_3 = arith.constant 0 : index
    %4 = vector.load %arg3[%c0_2, %c0_3] : memref<2x1024xf32, #tpu.memory_space<vmem>>, vector<2x1024xf32>
    tpu.vector_store %arg3[%c0_2, %c0_3], %3 {strides = array<i32>} : memref<2x1024xf32, #tpu.memory_space<vmem>>, vector<2x1024xf32>,
    return
  }
  func.func @transform_0(%arg0: i32) -> i32 {
    %c0_i32 = arith.constant 0 : i32
    %c0_i32_0 = arith.constant 0 : i32
    return %c0_i32 : i32
  }
  func.func @transform_1(%arg0: i32) -> (i32, i32) {
    %c0_i32 = arith.constant 0 : i32
    %c0_i32_0 = arith.constant 0 : i32
    return %arg0, %c0_i32 : i32, i32
  }
  func.func @transform_2(%arg0: i32) -> (i32, i32) {
    %c0_i32 = arith.constant 0 : i32
    %c0_i32_0 = arith.constant 0 : i32
    return %arg0, %c0_i32 : i32, i32
  }
}

</mosaic_0001>

<bundles_post_ra>
// kernel: random_intensity_scale.1
= control target key start
LH: loop header
LB: loop body
LE: loop exit
PB: predicated region body
PF: predicated region fallthrough
CT: control target
= control target key end

     0   :  { %s54_s0 = inlined_call_operand.<no memory space> [shape: f32[1], index: 0, kind: input, shape index: {}]   ;;  %s55_s1 = inlined_call_operand.vmem [shape: f32[2,1024], index: 1, kind: input, shape index: {}, may-alias: {1,2}]   ;;  %s56_s2 = inlined_call_operand.vmem [shape: f32[2,1024], index: 2, kind: output, shape index: {}, may-alias: {1,2}]  }
   0x1   :  { %v12_v0 = vld [vmem:[%s55_s1] sm:$0xff]  ;;  %v15_v1 = vstv %s54_s0  ;;  %v13_v2 = vld [vmem:[%s55_s1 + $0x8] sm:$0xff] }
   0x2   :  { %v16_v3 = vmul.f32 %v15_v1, %v12_v0  ;;  %v17_v4 = vmul.f32 %v15_v1, %v13_v2 }
   0x4   :  { %18 = vst [vmem:[%s56_s2] sm:$0xff] %v16_v3 }
   0x5   :  { %19 = vst [vmem:[%s56_s2 + $0x8] sm:$0xff] %v17_v4 }

</bundles_post_ra>
